<compile_context>
chip_gen: v5e
topology: v5e:2x2
jax: 0.10.0
libtpu: 0.0.40
codegen_flags: <defaults>
</compile_context>

<pallas_src>
import functools

import jax
import jax.numpy as jnp
from jax import lax
from jax.experimental import pallas as pl
from jax.experimental.pallas import tpu as pltpu


def _mha_kernel(x_ref, wqkv_ref, wp_ref, bp_ref, o_ref, *, n_head, head_size):
    # x_ref:    (Bb, T, C)            batch block
    # wqkv_ref: (C, 3*C)              fused QKV weights, columns = [q heads | k heads | v heads]
    # wp_ref:   (n_head, hs, C)       per-head slices of the output projection
    # bp_ref:   (1, C)                output-projection bias
    # o_ref:    (Bb, T, C)
    Bb, T, C = x_ref.shape
    dtype = x_ref.dtype

    # ---- fused QKV projection: one wide, lane-dense MXU matmul ----
    x2 = x_ref[...].reshape(Bb * T, C)                      # merge (Bb, T) -> rows (cheap)
    qkv = jnp.dot(x2, wqkv_ref[...],
                  preferred_element_type=jnp.float32)       # (Bb*T, 3*C), f32 accumulate
    qkv = qkv.reshape(Bb, T, 3 * C)

    # ---- additive finite causal mask, built once and shared by all heads ----
    row = lax.broadcasted_iota(jnp.int32, (T, T), 0)
    col = lax.broadcasted_iota(jnp.int32, (T, T), 1)
    mask = jnp.where(col <= row, 0.0, -1e30).astype(jnp.float32)   # (T, T)

    scale = jnp.float32(head_size) ** -0.5

    acc = jnp.zeros((Bb * T, C), jnp.float32)               # projected output accumulator
    for h in range(n_head):                                 # small static loop over heads
        lo = h * head_size
        q = (qkv[:, :, lo:lo + head_size] * scale).astype(dtype)          # (Bb, T, hs)
        k = qkv[:, :, C + lo:C + lo + head_size].astype(dtype)            # (Bb, T, hs)
        v = qkv[:, :, 2 * C + lo:2 * C + lo + head_size].astype(dtype)    # (Bb, T, hs)

        # scores, batched over the Bb sequences of this block
        wei = jnp.einsum('bqd,bkd->bqk', q, k,
                         preferred_element_type=jnp.float32)              # (Bb, T, T)
        wei = wei + mask                                                  # broadcast add

        # numerically stable softmax in f32; normalization deferred past the PV matmul
        m = jnp.max(wei, axis=-1, keepdims=True)
        p = jnp.exp(wei - m)
        denom = jnp.sum(p, axis=-1, keepdims=True)

        ctx = jnp.einsum('bqk,bkd->bqd', p.astype(dtype), v,
                         preferred_element_type=jnp.float32)              # (Bb, T, hs)
        ctx = ctx * pl.reciprocal(denom, approx=True)                     # EUP recip + VPU mul

        # accumulate the output projection directly (no concat of head outputs)
        acc = acc + jnp.dot(ctx.reshape(Bb * T, head_size).astype(dtype),
                            wp_ref[h],
                            preferred_element_type=jnp.float32)           # (Bb*T, C)

    out = acc + bp_ref[...].astype(jnp.float32)             # bias broadcast over rows
    o_ref[...] = out.reshape(Bb, T, C).astype(o_ref.dtype)


def multi_head_attention(x, wq, wk, wv, wp, bp, *, block_b=None):
    """x: (B, T, C); wq/wk/wv: (n_head, C, head_size) (pre-transposed so y = x @ W);
    wp: (n_head*head_size, C); bp: (C,)."""
    B, T, C = x.shape
    n_head, _, head_size = wq.shape
    assert n_head * head_size == C

    # Pack per-head QKV weights into one (C, 3*C) matrix so the projection is a single
    # wide MXU matmul. Columns: [q_h0 .. q_h{H-1} | k_h0 .. | v_h0 ..], each hs wide.
    def heads_to_cols(w):                                   # (H, C, hs) -> (C, H*hs)
        return jnp.transpose(w, (1, 0, 2)).reshape(C, n_head * head_size)

    wqkv = jnp.concatenate(
        [heads_to_cols(wq), heads_to_cols(wk), heads_to_cols(wv)], axis=1)  # (C, 3*C)
    wp3 = wp.reshape(n_head, head_size, C)                  # per-head projection slices
    bp2 = bp.reshape(1, C)

    if block_b is None:
        # Largest divisor of B whose activation block fits a small VMEM budget,
        # so each grid step does enough work to amortize per-step overhead.
        block_b = 1
        budget = 2 * 1024 * 1024
        for cand in range(1, B + 1):
            if B % cand == 0 and cand * T * C * x.dtype.itemsize <= budget:
                block_b = cand
    grid = (B // block_b,)

    kernel = functools.partial(_mha_kernel, n_head=n_head, head_size=head_size)

    return pl.pallas_call(
        kernel,
        out_shape=jax.ShapeDtypeStruct((B, T, C), x.dtype),
        grid_spec=pltpu.PrefetchScalarGridSpec(
            num_scalar_prefetch=0,
            grid=grid,
            in_specs=[
                pl.BlockSpec((block_b, T, C), lambda b: (b, 0, 0)),
                pl.BlockSpec((C, 3 * C), lambda b: (0, 0)),
                pl.BlockSpec((n_head, head_size, C), lambda b: (0, 0, 0)),
                pl.BlockSpec((1, C), lambda b: (0, 0)),
            ],
            out_specs=pl.BlockSpec((block_b, T, C), lambda b: (b, 0, 0)),
        ),
        compiler_params=pltpu.CompilerParams(
            dimension_semantics=("parallel",)),
    )(x, wqkv, wp3, bp2)


def _reference(x, wq, wk, wv, wp, bp):
    """Pure-JAX reference mirroring the PyTorch forward (eval mode)."""
    B, T, C = x.shape
    n_head, _, hs = wq.shape
    causal = jnp.tril(jnp.ones((T, T), dtype=bool))
    outs = []
    for h in range(n_head):
        q = x @ wq[h]
        k = x @ wk[h]
        v = x @ wv[h]
        wei = (q @ jnp.swapaxes(k, -2, -1)) * (hs ** -0.5)
        wei = jnp.where(causal, wei, -jnp.inf)
        wei = jax.nn.softmax(wei, axis=-1)
        outs.append(wei @ v)
    cat = jnp.concatenate(outs, axis=-1)
    return cat @ wp + bp


if __name__ == "__main__":
    # Small config: batch=2, block_size (seq) = 8, n_embd = 32, n_head = 4, head_size = 8
    B, T, C, n_head = 2, 8, 32, 4
    head_size = C // n_head

    key = jax.random.PRNGKey(0)
    k_x, k_q, k_k, k_v, k_p, k_b = jax.random.split(key, 6)

    x = jax.random.normal(k_x, (B, T, C), dtype=jnp.float32)
    # nn.Linear(in=C, out=head_size, bias=False) weights stored pre-transposed as (C, head_size)
    wq = jax.random.normal(k_q, (n_head, C, head_size), dtype=jnp.float32) * 0.1
    wk = jax.random.normal(k_k, (n_head, C, head_size), dtype=jnp.float32) * 0.1
    wv = jax.random.normal(k_v, (n_head, C, head_size), dtype=jnp.float32) * 0.1
    # proj: nn.Linear(n_head*head_size, n_embd) with bias, stored pre-transposed
    wp = jax.random.normal(k_p, (n_head * head_size, C), dtype=jnp.float32) * 0.1
    bp = jax.random.normal(k_b, (C,), dtype=jnp.float32) * 0.1

    out = multi_head_attention(x, wq, wk, wv, wp, bp)
    jax.block_until_ready(out)

    ref = _reference(x, wq, wk, wv, wp, bp)
    assert out.shape == (B, T, C)
    # Slightly relaxed tolerance because softmax normalization uses the EUP
    # approximate reciprocal (pl.reciprocal(approx=True)).
    assert jnp.allclose(out, ref, atol=2e-3, rtol=2e-3)

    print("KERNEL_OK")
</pallas_src>

<mosaic_0001>
module attributes {stable_mosaic.version = 11 : i64} {
  func.func @_mha_kernel(%arg0: i32, %arg1: memref<2x8x32xf32, #tpu.memory_space<vmem>>, %arg2: memref<32x96xf32, #tpu.memory_space<vmem>>, %arg3: memref<4x8x32xf32, #tpu.memory_space<vmem>>, %arg4: memref<1x32xf32, #tpu.memory_space<vmem>>, %arg5: memref<2x8x32xf32, #tpu.memory_space<vmem>>) attributes {dimension_semantics = [#tpu.dimension_semantics<parallel>], iteration_bounds = array<i64: 1>, scalar_prefetch = 0 : i64, scratch_operands = 0 : i64, tpu.core_type = #tpu.core_type<tc>, window_params = [{transform_indices = @transform_0, window_bounds = array<i64: 2, 8, 32>}, {pipeline_mode = #tpu.pipeline_mode<synchronous>, transform_indices = @transform_1, window_bounds = array<i64: 32, 96>}, {pipeline_mode = #tpu.pipeline_mode<synchronous>, transform_indices = @transform_2, window_bounds = array<i64: 4, 8, 32>}, {pipeline_mode = #tpu.pipeline_mode<synchronous>, transform_indices = @transform_3, window_bounds = array<i64: 1, 32>}, {transform_indices = @transform_4, window_bounds = array<i64: 2, 8, 32>}]} {
    %c0 = arith.constant 0 : index
    %c0_0 = arith.constant 0 : index
    %c0_1 = arith.constant 0 : index
    %0 = vector.load %arg1[%c0, %c0_0, %c0_1] : memref<2x8x32xf32, #tpu.memory_space<vmem>>, vector<2x8x32xf32>
    %1 = vector.shape_cast %0 : vector<2x8x32xf32> to vector<16x32xf32>
    %c0_2 = arith.constant 0 : index
    %c0_3 = arith.constant 0 : index
    %2 = vector.load %arg2[%c0_2, %c0_3] : memref<32x96xf32, #tpu.memory_space<vmem>>, vector<32x96xf32>
    %cst = arith.constant dense<0.000000e+00> : vector<16x96xf32>
    %3 = tpu.matmul %1, %2, %cst {dimension_numbers = #tpu.dot_dimension_numbers<[1], [0], [0], [1], [0, 0, 1, 1], [], []>} : vector<16x32xf32>, vector<32x96xf32>, vector<16x96xf32> -> vector<16x96xf32>
    %4 = vector.shape_cast %3 : vector<16x96xf32> to vector<2x8x96xf32>
    %5 = tpu.iota {dimensions = array<i32: 0>} : vector<8x8xi32>
    %6 = tpu.iota {dimensions = array<i32: 1>} : vector<8x8xi32>
    %7 = arith.cmpi sle, %6, %5 : vector<8x8xi32>
    %cst_4 = arith.constant 0.000000e+00 : f32
    %cst_5 = arith.constant -1.000000e+30 : f32
    %8 = vector.broadcast %cst_4 : f32 to vector<8x8xf32>
    %9 = vector.broadcast %cst_5 : f32 to vector<8x8xf32>
    %10 = arith.select %7, %8, %9 : vector<8x8xi1>, vector<8x8xf32>
    %cst_6 = arith.constant 8.000000e+00 : f32
    %cst_7 = arith.constant -5.000000e-01 : f32
    %11 = math.powf %cst_6, %cst_7 : f32
    %cst_8 = arith.constant 0.000000e+00 : f32
    %12 = vector.broadcast %cst_8 : f32 to vector<16x32xf32>
    %13 = vector.extract_strided_slice %4 {offsets = [0, 0, 0], sizes = [2, 8, 8], strides = [1, 1, 1]} : vector<2x8x96xf32> to vector<2x8x8xf32>
    %14 = vector.broadcast %11 : f32 to vector<2x8x8xf32>
    %15 = arith.mulf %13, %14 : vector<2x8x8xf32>
    %16 = vector.extract_strided_slice %4 {offsets = [0, 0, 32], sizes = [2, 8, 8], strides = [1, 1, 1]} : vector<2x8x96xf32> to vector<2x8x8xf32>
    %17 = vector.extract_strided_slice %4 {offsets = [0, 0, 64], sizes = [2, 8, 8], strides = [1, 1, 1]} : vector<2x8x96xf32> to vector<2x8x8xf32>
    "tpu.trace_start"() <{level = 10 : i32, message = "bqd,bkd->bqk"}> : () -> ()
    %cst_9 = arith.constant dense<0.000000e+00> : vector<2x8x8xf32>
    %18 = tpu.matmul %15, %16, %cst_9 {dimension_numbers = #tpu.dot_dimension_numbers<[2], [2], [1], [1], [0, 0, 0, 1, 1, 1], [0], [0]>} : vector<2x8x8xf32>, vector<2x8x8xf32>, vector<2x8x8xf32> -> vector<2x8x8xf32>
    "tpu.trace_stop"() : () -> ()
    %19 = vector.shape_cast %10 : vector<8x8xf32> to vector<1x8x8xf32>
    %20 = vector.broadcast %19 : vector<1x8x8xf32> to vector<2x8x8xf32>
    %21 = arith.addf %18, %20 : vector<2x8x8xf32>
    %cst_10 = arith.constant dense<0xFF800000> : vector<2x8xf32>
    %22 = vector.multi_reduction <maximumf>, %21, %cst_10 [2] : vector<2x8x8xf32> to vector<2x8xf32>
    %23 = vector.shape_cast %22 : vector<2x8xf32> to vector<2x8x1xf32>
    %24 = vector.broadcast %23 : vector<2x8x1xf32> to vector<2x8x8xf32>
    %25 = arith.subf %21, %24 : vector<2x8x8xf32>
    %26 = math.exp %25 : vector<2x8x8xf32>
    %cst_11 = arith.constant dense<0.000000e+00> : vector<2x8xf32>
    %27 = vector.multi_reduction <add>, %26, %cst_11 [2] : vector<2x8x8xf32> to vector<2x8xf32>
    %28 = vector.shape_cast %27 : vector<2x8xf32> to vector<2x8x1xf32>
    "tpu.trace_start"() <{level = 10 : i32, message = "bqk,bkd->bqd"}> : () -> ()
    %cst_12 = arith.constant dense<0.000000e+00> : vector<2x8x8xf32>
    %29 = tpu.matmul %26, %17, %cst_12 {dimension_numbers = #tpu.dot_dimension_numbers<[2], [1], [1], [2], [0, 0, 0, 1, 1, 2], [0], [0]>} : vector<2x8x8xf32>, vector<2x8x8xf32>, vector<2x8x8xf32> -> vector<2x8x8xf32>
    "tpu.trace_stop"() : () -> ()
    %30 = tpu.reciprocal %28 {approx = true} : vector<2x8x1xf32> -> vector<2x8x1xf32>
    %31 = vector.broadcast %30 : vector<2x8x1xf32> to vector<2x8x8xf32>
    %32 = arith.mulf %29, %31 : vector<2x8x8xf32>
    %33 = vector.shape_cast %32 : vector<2x8x8xf32> to vector<16x8xf32>
    %c0_13 = arith.constant 0 : index
    %c0_14 = arith.constant 0 : index
    %c0_15 = arith.constant 0 : index
    %34 = vector.load %arg3[%c0_13, %c0_14, %c0_15] : memref<4x8x32xf32, #tpu.memory_space<vmem>>, vector<1x8x32xf32>
    %35 = vector.shape_cast %34 : vector<1x8x32xf32> to vector<8x32xf32>
    %cst_16 = arith.constant dense<0.000000e+00> : vector<16x32xf32>
    %36 = tpu.matmul %33, %35, %cst_16 {dimension_numbers = #tpu.dot_dimension_numbers<[1], [0], [0], [1], [0, 0, 1, 1], [], []>} : vector<16x8xf32>, vector<8x32xf32>, vector<16x32xf32> -> vector<16x32xf32>
    %37 = arith.addf %12, %36 : vector<16x32xf32>
    %38 = vector.extract_strided_slice %4 {offsets = [0, 0, 8], sizes = [2, 8, 8], strides = [1, 1, 1]} : vector<2x8x96xf32> to vector<2x8x8xf32>
    %39 = vector.broadcast %11 : f32 to vector<2x8x8xf32>
    %40 = arith.mulf %38, %39 : vector<2x8x8xf32>
    %41 = vector.extract_strided_slice %4 {offsets = [0, 0, 40], sizes = [2, 8, 8], strides = [1, 1, 1]} : vector<2x8x96xf32> to vector<2x8x8xf32>
    %42 = vector.extract_strided_slice %4 {offsets = [0, 0, 72], sizes = [2, 8, 8], strides = [1, 1, 1]} : vector<2x8x96xf32> to vector<2x8x8xf32>
    "tpu.trace_start"() <{level = 10 : i32, message = "bqd,bkd->bqk"}> : () -> ()
    %cst_17 = arith.constant dense<0.000000e+00> : vector<2x8x8xf32>
    %43 = tpu.matmul %40, %41, %cst_17 {dimension_numbers = #tpu.dot_dimension_numbers<[2], [2], [1], [1], [0, 0, 0, 1, 1, 1], [0], [0]>} : vector<2x8x8xf32>, vector<2x8x8xf32>, vector<2x8x8xf32> -> vector<2x8x8xf32>
    "tpu.trace_stop"() : () -> ()
    %44 = vector.shape_cast %10 : vector<8x8xf32> to vector<1x8x8xf32>
    %45 = vector.broadcast %44 : vector<1x8x8xf32> to vector<2x8x8xf32>
    %46 = arith.addf %43, %45 : vector<2x8x8xf32>
    %cst_18 = arith.constant dense<0xFF800000> : vector<2x8xf32>
    %47 = vector.multi_reduction <maximumf>, %46, %cst_18 [2] : vector<2x8x8xf32> to vector<2x8xf32>
    %48 = vector.shape_cast %47 : vector<2x8xf32> to vector<2x8x1xf32>
    %49 = vector.broadcast %48 : vector<2x8x1xf32> to vector<2x8x8xf32>
    %50 = arith.subf %46, %49 : vector<2x8x8xf32>
    %51 = math.exp %50 : vector<2x8x8xf32>
    %cst_19 = arith.constant dense<0.000000e+00> : vector<2x8xf32>
    %52 = vector.multi_reduction <add>, %51, %cst_19 [2] : vector<2x8x8xf32> to vector<2x8xf32>
    %53 = vector.shape_cast %52 : vector<2x8xf32> to vector<2x8x1xf32>
    "tpu.trace_start"() <{level = 10 : i32, message = "bqk,bkd->bqd"}> : () -> ()
    %cst_20 = arith.constant dense<0.000000e+00> : vector<2x8x8xf32>
    %54 = tpu.matmul %51, %42, %cst_20 {dimension_numbers = #tpu.dot_dimension_numbers<[2], [1], [1], [2], [0, 0, 0, 1, 1, 2], [0], [0]>} : vector<2x8x8xf32>, vector<2x8x8xf32>, vector<2x8x8xf32> -> vector<2x8x8xf32>
    "tpu.trace_stop"() : () -> ()
    %55 = tpu.reciprocal %53 {approx = true} : vector<2x8x1xf32> -> vector<2x8x1xf32>
    %56 = vector.broadcast %55 : vector<2x8x1xf32> to vector<2x8x8xf32>
    %57 = arith.mulf %54, %56 : vector<2x8x8xf32>
    %58 = vector.shape_cast %57 : vector<2x8x8xf32> to vector<16x8xf32>
    %c1 = arith.constant 1 : index
    %c0_21 = arith.constant 0 : index
    %c0_22 = arith.constant 0 : index
    %59 = vector.load %arg3[%c1, %c0_21, %c0_22] : memref<4x8x32xf32, #tpu.memory_space<vmem>>, vector<1x8x32xf32>
    %60 = vector.shape_cast %59 : vector<1x8x32xf32> to vector<8x32xf32>
    %cst_23 = arith.constant dense<0.000000e+00> : vector<16x32xf32>
    %61 = tpu.matmul %58, %60, %cst_23 {dimension_numbers = #tpu.dot_dimension_numbers<[1], [0], [0], [1], [0, 0, 1, 1], [], []>} : vector<16x8xf32>, vector<8x32xf32>, vector<16x32xf32> -> vector<16x32xf32>
    %62 = arith.addf %37, %61 : vector<16x32xf32>
    %63 = vector.extract_strided_slice %4 {offsets = [0, 0, 16], sizes = [2, 8, 8], strides = [1, 1, 1]} : vector<2x8x96xf32> to vector<2x8x8xf32>
    %64 = vector.broadcast %11 : f32 to vector<2x8x8xf32>
    %65 = arith.mulf %63, %64 : vector<2x8x8xf32>
    %66 = vector.extract_strided_slice %4 {offsets = [0, 0, 48], sizes = [2, 8, 8], strides = [1, 1, 1]} : vector<2x8x96xf32> to vector<2x8x8xf32>
    %67 = vector.extract_strided_slice %4 {offsets = [0, 0, 80], sizes = [2, 8, 8], strides = [1, 1, 1]} : vector<2x8x96xf32> to vector<2x8x8xf32>
    "tpu.trace_start"() <{level = 10 : i32, message = "bqd,bkd->bqk"}> : () -> ()
    %cst_24 = arith.constant dense<0.000000e+00> : vector<2x8x8xf32>
    %68 = tpu.matmul %65, %66, %cst_24 {dimension_numbers = #tpu.dot_dimension_numbers<[2], [2], [1], [1], [0, 0, 0, 1, 1, 1], [0], [0]>} : vector<2x8x8xf32>, vector<2x8x8xf32>, vector<2x8x8xf32> -> vector<2x8x8xf32>
    "tpu.trace_stop"() : () -> ()
    %69 = vector.shape_cast %10 : vector<8x8xf32> to vector<1x8x8xf32>
    %70 = vector.broadcast %69 : vector<1x8x8xf32> to vector<2x8x8xf32>
    %71 = arith.addf %68, %70 : vector<2x8x8xf32>
    %cst_25 = arith.constant dense<0xFF800000> : vector<2x8xf32>
    %72 = vector.multi_reduction <maximumf>, %71, %cst_25 [2] : vector<2x8x8xf32> to vector<2x8xf32>
    %73 = vector.shape_cast %72 : vector<2x8xf32> to vector<2x8x1xf32>
    %74 = vector.broadcast %73 : vector<2x8x1xf32> to vector<2x8x8xf32>
    %75 = arith.subf %71, %74 : vector<2x8x8xf32>
    %76 = math.exp %75 : vector<2x8x8xf32>
    %cst_26 = arith.constant dense<0.000000e+00> : vector<2x8xf32>
    %77 = vector.multi_reduction <add>, %76, %cst_26 [2] : vector<2x8x8xf32> to vector<2x8xf32>
    %78 = vector.shape_cast %77 : vector<2x8xf32> to vector<2x8x1xf32>
    "tpu.trace_start"() <{level = 10 : i32, message = "bqk,bkd->bqd"}> : () -> ()
    %cst_27 = arith.constant dense<0.000000e+00> : vector<2x8x8xf32>
    %79 = tpu.matmul %76, %67, %cst_27 {dimension_numbers = #tpu.dot_dimension_numbers<[2], [1], [1], [2], [0, 0, 0, 1, 1, 2], [0], [0]>} : vector<2x8x8xf32>, vector<2x8x8xf32>, vector<2x8x8xf32> -> vector<2x8x8xf32>
    "tpu.trace_stop"() : () -> ()
    %80 = tpu.reciprocal %78 {approx = true} : vector<2x8x1xf32> -> vector<2x8x1xf32>
    %81 = vector.broadcast %80 : vector<2x8x1xf32> to vector<2x8x8xf32>
    %82 = arith.mulf %79, %81 : vector<2x8x8xf32>
    %83 = vector.shape_cast %82 : vector<2x8x8xf32> to vector<16x8xf32>
    %c2 = arith.constant 2 : index
    %c0_28 = arith.constant 0 : index
    %c0_29 = arith.constant 0 : index
    %84 = vector.load %arg3[%c2, %c0_28, %c0_29] : memref<4x8x32xf32, #tpu.memory_space<vmem>>, vector<1x8x32xf32>
    %85 = vector.shape_cast %84 : vector<1x8x32xf32> to vector<8x32xf32>
    %cst_30 = arith.constant dense<0.000000e+00> : vector<16x32xf32>
    %86 = tpu.matmul %83, %85, %cst_30 {dimension_numbers = #tpu.dot_dimension_numbers<[1], [0], [0], [1], [0, 0, 1, 1], [], []>} : vector<16x8xf32>, vector<8x32xf32>, vector<16x32xf32> -> vector<16x32xf32>
    %87 = arith.addf %62, %86 : vector<16x32xf32>
    %88 = vector.extract_strided_slice %4 {offsets = [0, 0, 24], sizes = [2, 8, 8], strides = [1, 1, 1]} : vector<2x8x96xf32> to vector<2x8x8xf32>
    %89 = vector.broadcast %11 : f32 to vector<2x8x8xf32>
    %90 = arith.mulf %88, %89 : vector<2x8x8xf32>
    %91 = vector.extract_strided_slice %4 {offsets = [0, 0, 56], sizes = [2, 8, 8], strides = [1, 1, 1]} : vector<2x8x96xf32> to vector<2x8x8xf32>
    %92 = vector.extract_strided_slice %4 {offsets = [0, 0, 88], sizes = [2, 8, 8], strides = [1, 1, 1]} : vector<2x8x96xf32> to vector<2x8x8xf32>
    "tpu.trace_start"() <{level = 10 : i32, message = "bqd,bkd->bqk"}> : () -> ()
    %cst_31 = arith.constant dense<0.000000e+00> : vector<2x8x8xf32>
    %93 = tpu.matmul %90, %91, %cst_31 {dimension_numbers = #tpu.dot_dimension_numbers<[2], [2], [1], [1], [0, 0, 0, 1, 1, 1], [0], [0]>} : vector<2x8x8xf32>, vector<2x8x8xf32>, vector<2x8x8xf32> -> vector<2x8x8xf32>
    "tpu.trace_stop"() : () -> ()
    %94 = vector.shape_cast %10 : vector<8x8xf32> to vector<1x8x8xf32>
    %95 = vector.broadcast %94 : vector<1x8x8xf32> to vector<2x8x8xf32>
    %96 = arith.addf %93, %95 : vector<2x8x8xf32>
    %cst_32 = arith.constant dense<0xFF800000> : vector<2x8xf32>
    %97 = vector.multi_reduction <maximumf>, %96, %cst_32 [2] : vector<2x8x8xf32> to vector<2x8xf32>
    %98 = vector.shape_cast %97 : vector<2x8xf32> to vector<2x8x1xf32>
    %99 = vector.broadcast %98 : vector<2x8x1xf32> to vector<2x8x8xf32>
    %100 = arith.subf %96, %99 : vector<2x8x8xf32>
    %101 = math.exp %100 : vector<2x8x8xf32>
    %cst_33 = arith.constant dense<0.000000e+00> : vector<2x8xf32>
    %102 = vector.multi_reduction <add>, %101, %cst_33 [2] : vector<2x8x8xf32> to vector<2x8xf32>
    %103 = vector.shape_cast %102 : vector<2x8xf32> to vector<2x8x1xf32>
    "tpu.trace_start"() <{level = 10 : i32, message = "bqk,bkd->bqd"}> : () -> ()
    %cst_34 = arith.constant dense<0.000000e+00> : vector<2x8x8xf32>
    %104 = tpu.matmul %101, %92, %cst_34 {dimension_numbers = #tpu.dot_dimension_numbers<[2], [1], [1], [2], [0, 0, 0, 1, 1, 2], [0], [0]>} : vector<2x8x8xf32>, vector<2x8x8xf32>, vector<2x8x8xf32> -> vector<2x8x8xf32>
    "tpu.trace_stop"() : () -> ()
    %105 = tpu.reciprocal %103 {approx = true} : vector<2x8x1xf32> -> vector<2x8x1xf32>
    %106 = vector.broadcast %105 : vector<2x8x1xf32> to vector<2x8x8xf32>
    %107 = arith.mulf %104, %106 : vector<2x8x8xf32>
    %108 = vector.shape_cast %107 : vector<2x8x8xf32> to vector<16x8xf32>
    %c3 = arith.constant 3 : index
    %c0_35 = arith.constant 0 : index
    %c0_36 = arith.constant 0 : index
    %109 = vector.load %arg3[%c3, %c0_35, %c0_36] : memref<4x8x32xf32, #tpu.memory_space<vmem>>, vector<1x8x32xf32>
    %110 = vector.shape_cast %109 : vector<1x8x32xf32> to vector<8x32xf32>
    %cst_37 = arith.constant dense<0.000000e+00> : vector<16x32xf32>
    %111 = tpu.matmul %108, %110, %cst_37 {dimension_numbers = #tpu.dot_dimension_numbers<[1], [0], [0], [1], [0, 0, 1, 1], [], []>} : vector<16x8xf32>, vector<8x32xf32>, vector<16x32xf32> -> vector<16x32xf32>
    %112 = arith.addf %87, %111 : vector<16x32xf32>
    %c0_38 = arith.constant 0 : index
    %c0_39 = arith.constant 0 : index
    %113 = vector.load %arg4[%c0_38, %c0_39] : memref<1x32xf32, #tpu.memory_space<vmem>>, vector<1x32xf32>
    %114 = vector.broadcast %113 : vector<1x32xf32> to vector<16x32xf32>
    %115 = arith.addf %112, %114 : vector<16x32xf32>
    %116 = vector.shape_cast %115 : vector<16x32xf32> to vector<2x8x32xf32>
    %c0_40 = arith.constant 0 : index
    %c0_41 = arith.constant 0 : index
    %c0_42 = arith.constant 0 : index
    %117 = vector.load %arg5[%c0_40, %c0_41, %c0_42] : memref<2x8x32xf32, #tpu.memory_space<vmem>>, vector<2x8x32xf32>
    tpu.vector_store %arg5[%c0_40, %c0_41, %c0_42], %116 {strides = array<i32>} : memref<2x8x32xf32, #tpu.memory_space<vmem>>, vector<2x8x32xf32>,
    return
  }
  func.func @transform_0(%arg0: i32) -> (i32, i32, i32) {
    %c0_i32 = arith.constant 0 : i32
    %c0_i32_0 = arith.constant 0 : i32
    %c0_i32_1 = arith.constant 0 : i32
    return %arg0, %c0_i32, %c0_i32_0 : i32, i32, i32
  }
  func.func @transform_1(%arg0: i32) -> (i32, i32) {
    %c0_i32 = arith.constant 0 : i32
    %c0_i32_0 = arith.constant 0 : i32
    %c0_i32_1 = arith.constant 0 : i32
    return %c0_i32, %c0_i32_0 : i32, i32
  }
  func.func @transform_2(%arg0: i32) -> (i32, i32, i32) {
    %c0_i32 = arith.constant 0 : i32
    %c0_i32_0 = arith.constant 0 : i32
    %c0_i32_1 = arith.constant 0 : i32
    %c0_i32_2 = arith.constant 0 : i32
    return %c0_i32, %c0_i32_0, %c0_i32_1 : i32, i32, i32
  }
  func.func @transform_3(%arg0: i32) -> (i32, i32) {
    %c0_i32 = arith.constant 0 : i32
    %c0_i32_0 = arith.constant 0 : i32
    %c0_i32_1 = arith.constant 0 : i32
    return %c0_i32, %c0_i32_0 : i32, i32
  }
  func.func @transform_4(%arg0: i32) -> (i32, i32, i32) {
    %c0_i32 = arith.constant 0 : i32
    %c0_i32_0 = arith.constant 0 : i32
    %c0_i32_1 = arith.constant 0 : i32
    return %arg0, %c0_i32, %c0_i32_0 : i32, i32, i32
  }
}

</mosaic_0001>

<bundles_post_ra>
// kernel: tpu_custom_call.1
= control target key start
LH: loop header
LB: loop body
LE: loop exit
PB: predicated region body
PF: predicated region fallthrough
CT: control target
= control target key end

     0   :  { %9 = vsyncpa [#allocation3], 0  ;;  %s1166_s0 = inlined_call_operand.hbm [shape: f32[2,8,32], index: 0, kind: input, shape index: {}]   ;;  %s1167_s1 = inlined_call_operand.hbm [shape: f32[32,96], index: 1, kind: input, shape index: {}]   ;;  %s1168_s2 = inlined_call_operand.hbm [shape: f32[4,8,32], index: 2, kind: input, shape index: {}]   ;;  %s1169_s3 = inlined_call_operand.vmem [shape: f32[1,32], index: 3, kind: input, shape index: {}]   ;;  %s1170_s4 = inlined_call_operand.hbm [shape: f32[2,8,32], index: 4, kind: output, shape index: {}]  }
   0x1   :  { %10 = vsyncpa [#allocation6], 0 }
   0x2   :  { %11 = vsyncpa [#allocation4], 0  ;;  %s29_s17 = sshll.u32 %s1167_s1, 4  ;;  %s972_s18 = smov [#allocation5]   ;;  %s30_s17 = int_to_ptr.hbm [resolvable:$true] %s29_s17 }
   0x3   :  { %s31_s19 = sshll.u32 %s972_s18, 4  ;;  %s16_s22 = sshll.u32 %s1166_s0, 4  ;;  %s32_s19 = int_to_ptr.vmem [resolvable:$true] %s31_s19  ;;  %s17_s22 = int_to_ptr.hbm [resolvable:$true] %s16_s22 }
   0x4   :  { %s973_s23 = smov 128   ;;  %s974_s24 = smov 8  }
   0x5   :  { %37 = dma.hbm_to_vmem [thread:$0]  %s30_s17, 512, %s32_s19, [#allocation6], %s973_s23, %s973_s23, %s974_s24  }
   0x6   :  { %s975_s25 = smov [#allocation2]   ;;  %s42_s1 = sshll.u32 %s1168_s2, 4  ;;  %s43_s1 = int_to_ptr.hbm [resolvable:$true] %s42_s1 }
   0x7   :  { %s18_s26 = sshll.u32 %s975_s25, 4  ;;  %s976_s0 = smov [#allocation7]   ;;  %s19_s26 = int_to_ptr.vmem [resolvable:$true] %s18_s26 }
   0x8   :  { %24 = dma.hbm_to_vmem [thread:$0]  %s17_s22, 256, %s19_s26, [#allocation3], %s973_s23, %s973_s23, %s974_s24  }
   0x9   :  { %s44_s29 = sshll.u32 %s976_s0, 4  ;;  %s45_s29 = int_to_ptr.vmem [resolvable:$true] %s44_s29 }
   0xa   :  { %50 = dma.hbm_to_vmem [thread:$0]  %s43_s1, 512, %s45_s29, [#allocation6], %s973_s23, %s973_s23, %s974_s24  }
   0xb   :  { %966 = dma.done.wait [#allocation3], 256  }
   0xc   :  { %967 = vsyncadd [#allocation3], 4294967040 }
   0xd   :  { %968 = dma.done.wait [#allocation6], 1024  }
   0xe   :  { %969 = vsyncadd [#allocation6], 4294966272  ;;  %v70_v0 = vld [vmem:[#allocation5 + $0x18] sm:$0xff]  ;;  %v69_v1 = vld [vmem:[#allocation5 + $0x10] sm:$0xff]  ;;  %vm71_vm0 = vcmask 261120   ;;  %s977_s2 = smov 88   ;;  %v101_v14 = vlaneseq }
   0xf   :  { %90 = vmatpush.msra.mxu0 %v70_v0  ;;  %v68_v2 = vld [vmem:[#allocation5 + $0x8] sm:$0xff]  ;;  %v67_v3 = vld [vmem:[#allocation5] sm:$0xff]  ;;  %v65_v4 = vld [vmem:[#allocation2] sm:$0xff]  ;;  %s978_s30 = smov 96   ;;  %s979_s5 = smov 120   ;;  %vm112_vm1 = vcmask 64512  }
  0x10   :  { %v66_v5 = vld [vmem:[#allocation2 + $0x8] sm:$0xff]  ;;  %s980_s6 = smov 64   ;;  %v102_v15 = vshrl.u32 %v101_v14, 7  ;;  %v104_v16 = vand.u32 127, %v101_v14  ;;  %v981_v18 = vmov -1e+30  }
  0x11   :  { %91 = vmatpush.msra.mxu0 %v69_v1  ;;  %s982_s7 = smov 56   ;;  %s983_s8 = smov 80   ;;  %v240_v40 = vld [vmem:[#allocation7] sm:$0xff] }
  0x12   :  { %vm105_vm2 = vcmp.le.s32.totalorder %v104_v16, %v102_v15  ;;  %s984_s9 = smov 48   ;;  %s985_s10 = smov 72  }
  0x13   :  { %92 = vmatpush.msra.mxu0 %v68_v2  ;;  %v1060_v19 = vsel %vm105_vm2, 0.0, %v981_v18  ;;  %s986_s11 = smov 112   ;;  %s987_s12 = smov 104  }
  0x14   :  { %s988_s13 = smov 40   ;;  %s989_s16 = smov [#allocation8]  }
  0x15   :  { %93 = vmatpush.msra.mxu0 %v67_v3  ;;  %s769_s17 = sshll.u32 %s989_s16, 4  ;;  %s771_s20 = sshll.u32 %s1170_s4, 4  ;;  %s770_s17 = int_to_ptr.vmem [resolvable:$true] %s769_s17  ;;  %s772_s20 = int_to_ptr.hbm [resolvable:$true] %s771_s20 }
  0x16   :  { %785 = vmatmul.msk.f32.vlgmr.msra.gmra.mxu0 %vm71_vm0, %v65_v4 }
  0x17   :  { %423 = vmatpush.msrb.mxu0 %v240_v40 }
  0x1e   :  { %786 = vmatmul.msk.f32.gmra.mxu0 %vm71_vm0, %v66_v5 }
  0x93   :  { %v1035_v6 = vpop.f32.mrf.mxu0 }
  0x94   :  { %243 = vrot.lane.b32.xlu2 %v1035_v6, %s977_s2  ;;  %110 = vrot.lane.b32.xlu0 %v1035_v6, %s978_s30  ;;  %v1040_v7 = vmul.f32 0.35355338, %v1035_v6 }
  0x9b   :  { %v1042_v8 = vpop.f32.mrf.mxu0 }
  0x9c   :  { %241 = vrot.lane.b32.xlu2 %v1040_v7, %s979_s5  ;;  %139 = vrot.lane.b32.xlu1 %v1042_v8, %s978_s30  ;;  %v1054_v11 = vmul.f32 0.35355338, %v1042_v8 }
  0xa4   :  { %184 = vrot.lane.b32.xlu1 %v1035_v6, %s980_s6  ;;  %271 = vrot.lane.b32.xlu2 %v1042_v8, %s977_s2 }
  0xee   :  { %v244_v13 = vpop.permute.xlu2 %243 }
  0xf6   :  { %v242_v17 = vpop.permute.xlu2 %241 }
  0xfe   :  { %v272_v21 = vpop.permute.xlu2 %271 }
 0x106   :  { %v111_v9 = vpop.permute.xlu0 %110 }
 0x107   :  { %787 = vmatpush.xpose.msk.msra.mxu1 %vm112_vm1, %v111_v9 }
 0x10a   :  { %788 = vmatmul.msk.f32.vlgmr.msra.gmra.mxu1 %vm112_vm1, %v1040_v7 }
 0x10e   :  { %v140_v10 = vpop.permute.xlu1 %139 }
 0x10f   :  { %789 = vmatpush.xpose.msk.msra.mxu2 %vm112_vm1, %v140_v10 }
 0x112   :  { %790 = vmatmul.msk.f32.vlgmr.msra.gmra.mxu2 %vm112_vm1, %v1054_v11 }
 0x113   :  { %795 = vmatpush.xpose.msk.msrb.mxu2 %vm112_vm1, %v272_v21 }
 0x116   :  { %v185_v12 = vpop.permute.xlu1 %184 }
 0x117   :  { %205 = vmatpush.msrb.mxu1 %v185_v12 }
 0x119   :  { %793 = vmatpush.xpose.msk.msra.mxu1 %vm112_vm1, %v244_v13 }
 0x187   :  { %v135_v20 = vpop.f32.mrf.mxu1 }
 0x188   :  { %v136_v22 = vadd.f32 %v135_v20, %v1060_v19 }
 0x18a   :  { %v166_v23 = vsel %vm112_vm1, %v136_v22, -inf }
 0x18b   :  { %167 = vmax.xlane.f32.xlu0 %v166_v23 }
 0x195   :  { %v163_v24 = vpop.f32.mrf.mxu2 }
 0x196   :  { %v164_v25 = vadd.f32 %v163_v24, %v1060_v19 }
 0x198   :  { %v169_v26 = vsel %vm112_vm1, %v164_v25, -inf }
 0x199   :  { %170 = vmax.xlane.f32.xlu1 %v169_v26 }
 0x19f   :  { %210 = vrot.lane.b32.xlu0 %v1042_v8, %s980_s6 }
 0x1a7   :  { %315 = vrot.lane.b32.xlu0 %v1035_v6, %s982_s7 }
 0x1af   :  { %433 = vrot.lane.b32.xlu0 %v1035_v6, %s983_s8 }
 0x1b2   :  { %269 = vrot.lane.b32.xlu1 %v1054_v11, %s979_s5 }
 0x1fe   :  { %v168_v27 = vpop.xlane.xlu0 %167 }
 0x1ff   :  { %v172_v28 = vsub.f32 %v136_v22, %v168_v27 }
 0x201   :  { %v174_v29 = vmul.f32 1.442695, %v172_v28 }
 0x203   :  { %838 = vpow2.f32 %v174_v29 }
 0x209   :  { %v839_v30 = vpop.eup %838 }
 0x20a   :  { %791 = vmatmul.msk.f32.vlgmr.msrb.gmra.mxu1 %vm112_vm1, %v839_v30  ;;  %v178_v31 = vsel %vm112_vm1, %v839_v30, 0.0 }
 0x20b   :  { %179 = vadd.xlane.f32.xlu0 %v178_v31 }
 0x20c   :  { %v171_v32 = vpop.xlane.xlu1 %170 }
 0x20d   :  { %v173_v33 = vsub.f32 %v164_v25, %v171_v32 }
 0x20f   :  { %v176_v34 = vmul.f32 1.442695, %v173_v33 }
 0x211   :  { %840 = vpow2.f32 %v176_v34  ;;  %v211_v35 = vpop.permute.xlu0 %210 }
 0x212   :  { %231 = vmatpush.msra.mxu3 %v211_v35  ;;  %794 = vmatmul.msk.f32.vlgmr.msra.gmra.mxu1 %vm112_vm1, %v242_v17 }
 0x217   :  { %v841_v36 = vpop.eup %840 }
 0x218   :  { %792 = vmatmul.msk.f32.vlgmr.msra.gmra.mxu3 %vm112_vm1, %v841_v36  ;;  %v181_v52 = vsel %vm112_vm1, %v841_v36, 0.0 }
 0x219   :  { %v316_v37 = vpop.permute.xlu0 %315 }
 0x21a   :  { %336 = vmatpush.msrb.mxu3 %v316_v37 }
 0x21f   :  { %341 = vrot.lane.b32.xlu0 %v1042_v8, %s982_s7 }
 0x221   :  { %v434_v38 = vpop.permute.xlu0 %433 }
 0x222   :  { %803 = vmatpush.xpose.msk.msra.mxu3 %vm112_vm1, %v434_v38 }
 0x224   :  { %v270_v39 = vpop.permute.xlu1 %269 }
 0x225   :  { %796 = vmatmul.msk.f32.vlgmr.msrb.gmra.mxu2 %vm112_vm1, %v270_v39 }
 0x227   :  { %505 = vrot.lane.b32.xlu0 %v1035_v6, %s984_s9 }
 0x22f   :  { %624 = vrot.lane.b32.xlu0 %v1042_v8, %s985_s10 }
 0x27e   :  { %v180_v41 = vpop.xlane.xlu0 %179 }
 0x27f   :  { %842 = vrcp.f32 %v180_v41 }
 0x285   :  { %v843_v42 = vpop.eup %842 }
 0x287   :  { %v207_v43 = vpop.f32.mrf.mxu1 }
 0x288   :  { %v238_v44 = vmul.f32 %v843_v42, %v207_v43  ;;  %v562_v42 = vld [vmem:[#allocation7 + $0x10] sm:$0xff] }
 0x28a   :  { %801 = vmatmul.msk.f32.vlgmr.msrb.gmra.mxu0 %vm112_vm1, %v238_v44 }
 0x28f   :  { %v266_v45 = vpop.f32.mrf.mxu1 }
 0x290   :  { %v267_v46 = vadd.f32 %v266_v45, %v1060_v19 }
 0x291   :  { %v342_v47 = vpop.permute.xlu0 %341 }
 0x292   :  { %362 = vmatpush.msrb.mxu1 %v342_v47  ;;  %v297_v48 = vsel %vm112_vm1, %v267_v46, -inf }
 0x293   :  { %298 = vmax.xlane.f32.xlu2 %v297_v48 }
 0x299   :  { %v506_v56 = vpop.permute.xlu0 %505 }
 0x29b   :  { %v233_v2 = vpop.f32.mrf.mxu3 }
 0x2a1   :  { %v625_v59 = vpop.permute.xlu0 %624 }
 0x2a8   :  { %v294_v49 = vpop.f32.mrf.mxu2 }
 0x2a9   :  { %v295_v50 = vadd.f32 %v294_v49, %v1060_v19 }
 0x2ab   :  { %431 = vrot.lane.b32.xlu2 %v1040_v7, %s986_s11  ;;  %v300_v51 = vsel %vm112_vm1, %v295_v50, -inf }
 0x2ac   :  { %301 = vmax.xlane.f32.xlu1 %v300_v51 }
 0x2c5   :  { %459 = vrot.lane.b32.xlu1 %v1054_v11, %s986_s11 }
 0x2d4   :  { %182 = vadd.xlane.f32.xlu2 %v181_v52 }
 0x2ec   :  { %461 = vrot.lane.b32.xlu2 %v1042_v8, %s983_s8 }
 0x2f4   :  { %596 = vrot.lane.b32.xlu2 %v1035_v6, %s985_s10 }
 0x2fc   :  { %622 = vrot.lane.b32.xlu2 %v1054_v11, %s987_s12 }
 0x304   :  { %531 = vrot.lane.b32.xlu2 %v1042_v8, %s984_s9 }
 0x306   :  { %v299_v53 = vpop.xlane.xlu2 %298 }
 0x307   :  { %v303_v54 = vsub.f32 %v267_v46, %v299_v53  ;;  %v1127_v30 = vpop.f32.mrf.mxu0 }
 0x309   :  { %v305_v55 = vmul.f32 1.442695, %v303_v54 }
 0x30b   :  { %844 = vpow2.f32 %v305_v55 }
 0x30e   :  { %v432_v58 = vpop.permute.xlu2 %431 }
 0x311   :  { %v1099_v57 = vpop.eup %844 }
 0x312   :  { %797 = vmatmul.msk.f32.vlgmr.msrb.gmra.mxu3 %vm112_vm1, %v1099_v57  ;;  %v309_v39 = vsel %vm112_vm1, %v1099_v57, 0.0 }
 0x313   :  { %526 = vmatpush.msrb.mxu3 %v506_v56 }
 0x31a   :  { %804 = vmatmul.msk.f32.vlgmr.msra.gmra.mxu3 %vm112_vm1, %v432_v58 }
 0x31b   :  { %813 = vmatpush.xpose.msk.msra.mxu3 %vm112_vm1, %v625_v59 }
 0x31f   :  { %v302_v60 = vpop.xlane.xlu1 %301 }
 0x320   :  { %v304_v61 = vsub.f32 %v295_v50, %v302_v60 }
 0x322   :  { %v307_v62 = vmul.f32 1.442695, %v304_v61 }
 0x324   :  { %846 = vpow2.f32 %v307_v62 }
 0x32a   :  { %v847_v63 = vpop.eup %846 }
 0x32b   :  { %798 = vmatmul.msk.f32.vlgmr.msrb.gmra.mxu1 %vm112_vm1, %v847_v63  ;;  %v312_v21 = vsel %vm112_vm1, %v847_v63, 0.0 }
 0x337   :  { %v460_v5 = vpop.permute.xlu1 %459 }
 0x347   :  { %v183_v0 = vpop.xlane.xlu2 %182 }
 0x348   :  { %848 = vrcp.f32 %v183_v0 }
 0x34e   :  { %v849_v1 = vpop.eup %848 }
 0x34f   :  { %v462_v3 = vpop.permute.xlu2 %461  ;;  %v239_v4 = vmul.f32 %v849_v1, %v233_v2  ;;  %v725_v2 = vld [vmem:[#allocation7 + $0x18] sm:$0xff] }
 0x350   :  { %805 = vmatpush.xpose.msk.msra.mxu1 %vm112_vm1, %v462_v3 }
 0x351   :  { %802 = vmatmul.msk.f32.gmra.mxu0 %vm112_vm1, %v239_v4 }
 0x353   :  { %806 = vmatmul.msk.f32.vlgmr.msra.gmra.mxu1 %vm112_vm1, %v460_v5 }
 0x357   :  { %v597_v9 = vpop.permute.xlu2 %596 }
 0x358   :  { %811 = vmatpush.xpose.msk.msra.mxu0 %vm112_vm1, %v597_v9 }
 0x35f   :  { %v623_v10 = vpop.permute.xlu2 %622 }
 0x367   :  { %v532_v11 = vpop.permute.xlu2 %531 }
 0x368   :  { %552 = vmatpush.msrb.mxu1 %v532_v11 }
 0x395   :  { %v1110_v12 = vpop.f32.mrf.mxu3 }
 0x39d   :  { %v456_v13 = vpop.f32.mrf.mxu3 }
 0x39e   :  { %v457_v14 = vadd.f32 %v456_v13, %v1060_v19 }
 0x3a0   :  { %v487_v15 = vsel %vm112_vm1, %v457_v14, -inf }
 0x3a1   :  { %488 = vmax.xlane.f32.xlu1 %v487_v15 }
 0x3a8   :  { %v1116_v16 = vpop.f32.mrf.mxu1 }
 0x3ba   :  { %594 = vrot.lane.b32.xlu1 %v1040_v7, %s987_s12 }
 0x3ce   :  { %v1129_v31 = vpop.f32.mrf.mxu0 }
 0x3d0   :  { %v484_v17 = vpop.f32.mrf.mxu1 }
 0x3d1   :  { %v485_v18 = vadd.f32 %v484_v17, %v1060_v19 }
 0x3d3   :  { %v490_v20 = vsel %vm112_vm1, %v485_v18, -inf }
 0x3d4   :  { %491 = vmax.xlane.f32.xlu0 %v490_v20  ;;  %v837_v20 = vld [vmem:[%s1169_s3] ss:$0 sm:$0xff] }
 0x3e8   :  { %668 = vrot.lane.b32.xlu0 %v1035_v6, %s988_s13 }
 0x412   :  { %313 = vadd.xlane.f32.xlu0 %v312_v21 }
 0x414   :  { %v489_v22 = vpop.xlane.xlu1 %488 }
 0x415   :  { %v493_v23 = vsub.f32 %v457_v14, %v489_v22 }
 0x417   :  { %v495_v24 = vmul.f32 1.442695, %v493_v23 }
 0x419   :  { %850 = vpow2.f32 %v495_v24 }
 0x41f   :  { %v851_v7 = vpop.eup %850 }
 0x420   :  { %807 = vmatmul.msk.f32.vlgmr.msrb.gmra.mxu3 %vm112_vm1, %v851_v7  ;;  %v499_v40 = vsel %vm112_vm1, %v851_v7, 0.0 }
 0x421   :  { %747 = vmatpush.msrb.mxu3 %v725_v2 }
 0x428   :  { %814 = vmatmul.msk.f32.vlgmr.msra.gmra.mxu3 %vm112_vm1, %v623_v10 }
 0x42c   :  { %v595_v25 = vpop.permute.xlu1 %594 }
 0x42d   :  { %812 = vmatmul.msk.f32.vlgmr.msra.gmra.mxu0 %vm112_vm1, %v595_v25 }
 0x447   :  { %v492_v26 = vpop.xlane.xlu0 %491 }
 0x448   :  { %v494_v27 = vsub.f32 %v485_v18, %v492_v26 }
 0x44a   :  { %v497_v28 = vmul.f32 1.442695, %v494_v27 }
 0x44c   :  { %852 = vpow2.f32 %v497_v28 }
 0x452   :  { %v853_v6 = vpop.eup %852 }
 0x453   :  { %808 = vmatmul.msk.f32.vlgmr.msrb.gmra.mxu1 %vm112_vm1, %v853_v6  ;;  %v502_v41 = vsel %vm112_vm1, %v853_v6, 0.0 }
 0x45a   :  { %v669_v29 = vpop.permute.xlu0 %668 }
 0x45b   :  { %689 = vmatpush.msra.mxu1 %v669_v29 }
 0x485   :  { %v314_v52 = vpop.xlane.xlu0 %313 }
 0x4a3   :  { %v528_v32 = vpop.f32.mrf.mxu3 }
 0x4aa   :  { %v619_v33 = vpop.f32.mrf.mxu0 }
 0x4ab   :  { %v620_v34 = vadd.f32 %v619_v33, %v1060_v19  ;;  %v647_v35 = vpop.f32.mrf.mxu3 }
 0x4ac   :  { %v648_v36 = vadd.f32 %v647_v35, %v1060_v19  ;;  %v372_v19 = vld [vmem:[#allocation7 + $0x8] sm:$0xff] }
 0x4ad   :  { %v650_v37 = vsel %vm112_vm1, %v620_v34, -inf  ;;  %394 = vmatpush.msra.mxu2 %v372_v19 }
 0x4ae   :  { %651 = vmax.xlane.f32.xlu1 %v650_v37  ;;  %v653_v38 = vsel %vm112_vm1, %v648_v36, -inf }
 0x4af   :  { %654 = vmax.xlane.f32.xlu2 %v653_v38  ;;  %584 = vmatpush.msrb.mxu2 %v562_v42 }
 0x4b7   :  { %310 = vadd.xlane.f32.xlu2 %v309_v39 }
 0x4bf   :  { %500 = vadd.xlane.f32.xlu2 %v499_v40 }
 0x4c7   :  { %503 = vadd.xlane.f32.xlu2 %v502_v41  ;;  %694 = vrot.lane.b32.xlu1 %v1042_v8, %s988_s13 }
 0x4d0   :  { %v554_v0 = vpop.f32.mrf.mxu1 }
 0x521   :  { %v652_v43 = vpop.xlane.xlu1 %651 }
 0x522   :  { %v656_v44 = vsub.f32 %v620_v34, %v652_v43  ;;  %v655_v45 = vpop.xlane.xlu2 %654 }
 0x523   :  { %v657_v46 = vsub.f32 %v648_v36, %v655_v45 }
 0x524   :  { %v658_v47 = vmul.f32 1.442695, %v656_v44 }
 0x525   :  { %v660_v48 = vmul.f32 1.442695, %v657_v46 }
 0x526   :  { %854 = vpow2.f32 %v658_v47 }
 0x527   :  { %856 = vpow2.f32 %v660_v48 }
 0x52a   :  { %v311_v49 = vpop.xlane.xlu2 %310 }
 0x52b   :  { %858 = vrcp.f32 %v311_v49 }
 0x52c   :  { %v855_v50 = vpop.eup %854  ;;  %860 = vrcp.f32 %v314_v52 }
 0x52d   :  { %v857_v51 = vpop.eup %856  ;;  %815 = vmatmul.msk.f32.vlgmr.msra.gmra.mxu1 %vm112_vm1, %v855_v50  ;;  %v662_v8 = vsel %vm112_vm1, %v855_v50, 0.0 }
 0x52e   :  { %663 = vadd.xlane.f32.xlu1 %v662_v8  ;;  %v665_v53 = vsel %vm112_vm1, %v857_v51, 0.0 }
 0x52f   :  { %666 = vadd.xlane.f32.xlu2 %v665_v53 }
 0x531   :  { %v859_v54 = vpop.eup %858 }
 0x532   :  { %v369_v55 = vmul.f32 %v859_v54, %v1110_v12  ;;  %v501_v56 = vpop.xlane.xlu2 %500  ;;  %v861_v57 = vpop.eup %860 }
 0x533   :  { %862 = vrcp.f32 %v501_v56  ;;  %v370_v59 = vmul.f32 %v861_v57, %v1116_v16 }
 0x534   :  { %799 = vmatmul.msk.f32.vlgmr.msra.gmra.mxu2 %vm112_vm1, %v369_v55 }
 0x539   :  { %v695_v58 = vpop.permute.xlu1 %694  ;;  %v863_v61 = vpop.eup %862 }
 0x53a   :  { %715 = vmatpush.msrb.mxu0 %v695_v58  ;;  %v504_v60 = vpop.xlane.xlu2 %503  ;;  %v559_v62 = vmul.f32 %v863_v61, %v528_v32 }
 0x53b   :  { %816 = vmatmul.msk.f32.vlgmr.msrb.gmra.mxu0 %vm112_vm1, %v857_v51  ;;  %864 = vrcp.f32 %v504_v60 }
 0x53c   :  { %800 = vmatmul.msk.f32.gmra.mxu2 %vm112_vm1, %v370_v59 }
 0x541   :  { %v865_v63 = vpop.eup %864 }
 0x542   :  { %v560_v1 = vmul.f32 %v865_v63, %v554_v0 }
 0x544   :  { %809 = vmatmul.msk.f32.vlgmr.msrb.gmra.mxu2 %vm112_vm1, %v559_v62 }
 0x54c   :  { %810 = vmatmul.msk.f32.gmra.mxu2 %vm112_vm1, %v560_v1 }
 0x5a1   :  { %v664_v3 = vpop.xlane.xlu1 %663 }
 0x5a2   :  { %866 = vrcp.f32 %v664_v3  ;;  %v667_v10 = vpop.xlane.xlu2 %666 }
 0x5a3   :  { %868 = vrcp.f32 %v667_v10 }
 0x5a8   :  { %v867_v4 = vpop.eup %866 }
 0x5a9   :  { %v869_v11 = vpop.eup %868 }
 0x5aa   :  { %v691_v5 = vpop.f32.mrf.mxu1 }
 0x5ab   :  { %v722_v9 = vmul.f32 %v867_v4, %v691_v5 }
 0x5ad   :  { %817 = vmatmul.msk.f32.vlgmr.msrb.gmra.mxu3 %vm112_vm1, %v722_v9 }
 0x5b7   :  { %v396_v14 = vpop.f32.mrf.mxu2 }
 0x5b8   :  { %v717_v12 = vpop.f32.mrf.mxu0  ;;  %v426_v17 = vadd.f32 %v1127_v30, %v396_v14 }
 0x5b9   :  { %v723_v13 = vmul.f32 %v869_v11, %v717_v12 }
 0x5bb   :  { %818 = vmatmul.msk.f32.gmra.mxu3 %vm112_vm1, %v723_v13 }
 0x5bf   :  { %v399_v15 = vpop.f32.mrf.mxu2 }
 0x5c0   :  { %v429_v7 = vadd.f32 %v1129_v31, %v399_v15 }
 0x5c7   :  { %v586_v16 = vpop.f32.mrf.mxu2 }
 0x5c8   :  { %v592_v18 = vadd.f32 %v586_v16, %v426_v17 }
 0x5cf   :  { %v589_v24 = vpop.f32.mrf.mxu2 }
 0x5d0   :  { %v593_v25 = vadd.f32 %v589_v24, %v429_v7 }
 0x630   :  { %v749_v21 = vpop.f32.mrf.mxu3 }
 0x631   :  { %v755_v22 = vadd.f32 %v749_v21, %v592_v18 }
 0x633   :  { %v761_v23 = vadd.f32 %v837_v20, %v755_v22 }
 0x635   :  { %763 = vst.msk [vmem:[#allocation8] sm:$0xff] %vm71_vm0, %v761_v23 }
 0x63e   :  { %v752_v26 = vpop.f32.mrf.mxu3 }
 0x63f   :  { %v756_v27 = vadd.f32 %v752_v26, %v593_v25 }
 0x641   :  { %v762_v28 = vadd.f32 %v837_v20, %v756_v27 }
 0x643   :  { %764 = vst.msk [vmem:[#allocation8 + $0x8] sm:$0xff] %vm71_vm0, %v762_v28 }
 0x644   :  { %777 = dma.vmem_to_hbm [thread:$0]  %s770_s17, 256, %s772_s20, [#allocation4], %s973_s23, %s973_s23, %s974_s24  }
 0x645   :  { %970 = dma.done.wait [#allocation4], 256  }
 0x646   :  { %971 = vsyncadd [#allocation4], 4294967040 }
 0x647   :  { %782 = vsyncpa [#allocation3], 1 }
 0x648   :  { %783 = vsyncpa [#allocation6], 1 }
 0x649   :  { %784 = vsyncpa [#allocation4], 1 }

</bundles_post_ra>
